<compile_context>
chip_gen: v7x
topology: tpu7x:2x2x1
jax: 0.10.0
libtpu: 0.0.40
codegen_flags: <defaults>
</compile_context>

<pallas_src>
import jax
import jax.numpy as jnp
from jax.experimental import pallas as pl
from jax.experimental.pallas import tpu as pltpu

ZDIM = 8
IN_DIM = 135
HIDDEN = (128, 64, 32)
LN_EPS = 1e-5
# Big tiles: per-step overhead ~0.35us is comparable to the per-tile x DMA at
# 1024 rows, and VMEM use at 4096 rows is only a few MiB (well under the
# 16/32/32 MiB scoped defaults on v5e/v6e/v7x).
DEFAULT_BLOCK_ROWS = 4096


def _round_up(n, m):
    return ((n + m - 1) // m) * m


# ---------------------------------------------------------------------------
# Kernel
# ---------------------------------------------------------------------------
def _encoder_kernel(x_ref,
                    w1_ref, b1_ref,
                    w2_ref, b2_ref,
                    w3_ref, b3_ref,
                    w4_ref, b4_ref,
                    o_ref):
    """Fused MLP over one (TB, IN_DIM) batch tile; params are VMEM-resident.

    LayerNorm gamma/beta have been folded into the following Linear on the
    host, so LN here is purely (h - mu) * rsqrt(var + eps).
    """

    def layer_norm(h):
        inv_n = 1.0 / h.shape[-1]
        # One-pass moments: the two axis=-1 reductions (XLU) are independent,
        # so they co-issue with the VALU work instead of serializing behind a
        # full-width (h - mu). rsqrt goes to the EUP slot.
        s = jnp.sum(h, axis=-1, keepdims=True)
        s2 = jnp.sum(h * h, axis=-1, keepdims=True)
        mu = s * inv_n
        var = s2 * inv_n - mu * mu
        return (h - mu) * jax.lax.rsqrt(var + LN_EPS)

    def block(h, w_ref, b_ref):
        # Linear (MXU, f32 accumulate) -> ReLU -> (Dropout = identity) -> LN
        h = jnp.dot(h.astype(w_ref.dtype), w_ref[...],
                    preferred_element_type=jnp.float32) + b_ref[...]
        h = jnp.maximum(h, 0.0)
        return layer_norm(h)

    h = x_ref[...]
    h = block(h, w1_ref, b1_ref)
    h = block(h, w2_ref, b2_ref)
    h = block(h, w3_ref, b3_ref)
    # Final (folded) Linear(32, ZDIM), no activation / norm.
    out = jnp.dot(h.astype(w4_ref.dtype), w4_ref[...],
                  preferred_element_type=jnp.float32) + b4_ref[...]
    o_ref[...] = out.astype(o_ref.dtype)


# ---------------------------------------------------------------------------
# Host-side parameter prep (gamma/beta folding)
# ---------------------------------------------------------------------------
def _fold_params(params, matmul_dtype):
    """Fold LN gamma/beta into the following Linear; cast weights to matmul dtype.

    Input  : 14-tuple (w1,b1,g1,be1, w2,b2,g2,be2, w3,b3,g3,be3, w4,b4).
    Output : 8-tuple  (w1,b1, w2',b2', w3',b3', w4',b4') with weights in
             `matmul_dtype` and (1,out) f32 biases.
    """
    p = [jnp.asarray(q, jnp.float32) for q in params]
    (w1, b1, g1, be1, w2, b2, g2, be2, w3, b3, g3, be3, w4, b4) = p

    def row(v):
        return v.reshape(1, -1)

    b1, b2, b3, b4 = row(b1), row(b2), row(b3), row(b4)
    g1, be1, g2, be2, g3, be3 = map(row, (g1, be1, g2, be2, g3, be3))

    # (gamma * n + beta) @ W + b  ==  n @ (diag(gamma) @ W) + (beta @ W + b)
    w2f = g1.reshape(-1, 1) * w2
    b2f = b2 + be1 @ w2
    w3f = g2.reshape(-1, 1) * w3
    b3f = b3 + be2 @ w3
    w4f = g3.reshape(-1, 1) * w4
    b4f = b4 + be3 @ w4

    weights = [w.astype(matmul_dtype) for w in (w1, w2f, w3f, w4f)]
    biases = [b1, b2f, b3f, b4f]  # stay f32
    return (weights[0], biases[0], weights[1], biases[1],
            weights[2], biases[2], weights[3], biases[3])


def _const_param_spec(shape):
    """Full-shape, constant-index-map BlockSpec for a VMEM-resident parameter.

    Single-buffered: the block never changes across grid steps, so
    double-buffering it is pure VMEM waste (mostly relevant on v7x, 64 MiB).
    """
    index_map = lambda i: (0,) * len(shape)
    try:
        return pl.BlockSpec(shape, index_map, pipeline_mode=pl.Buffered(1))
    except (TypeError, ValueError):
        # Older Pallas without pipeline_mode / Buffered(1): plain spec is fine,
        # the extra buffer is only ~100 KB total here.
        return pl.BlockSpec(shape, index_map)


# ---------------------------------------------------------------------------
# Wrapper
# ---------------------------------------------------------------------------
def encoder_forward(x, params, *, block_rows=DEFAULT_BLOCK_ROWS,
                    matmul_dtype=jnp.float32, min_grid_steps=2):
    """Run the fused Encoder MLP.

    x:      (B, 135) float array.
    params: 14-tuple matching the PyTorch module: per hidden layer
            (weight (in,out), bias (out,)/(1,out), gamma, beta), then the
            final Linear weight/bias. Folding into 8 kernel params happens here.
    block_rows: max batch-tile size (rounded to a multiple of 16). The actual
            tile is also capped so the grid keeps >= `min_grid_steps` steps
            (keeps both v7x TensorCores busy). On v5e, if profiles show the
            single vst slot saturating from spills, sweep block_rows in
            {512, 1024, 2048}.
    matmul_dtype: dtype of x and the weight matrices fed to the MXU.
            jnp.bfloat16 is recommended on ALL generations (v5e included —
            its MXU takes bf16, and bias/ReLU/LN math stays f32); it halves
            the dominant HBM stream. Default f32 for exact parity.
    """
    B, F = x.shape
    assert F == IN_DIM, f"expected {IN_DIM} input features, got {F}"

    folded = _fold_params(params, matmul_dtype)

    # Tile rows: multiple of 16 (covers bf16 sublane packing), capped both by
    # block_rows and by keeping the grid >= min_grid_steps steps.
    tb = min(_round_up(block_rows, 16),
             max(16, _round_up(pl.cdiv(max(B, 1), min_grid_steps), 16)))
    b_pad = _round_up(B, tb)

    x = x.astype(matmul_dtype)
    if b_pad != B:
        x = jnp.pad(x, ((0, b_pad - B), (0, 0)))

    grid = (b_pad // tb,)
    x_spec = pl.BlockSpec((tb, IN_DIM), lambda i: (i, 0))
    param_specs = [_const_param_spec(p.shape) for p in folded]
    # Output stays lane-thin (8): its traffic is tiny vs the x stream.
    out_spec = pl.BlockSpec((tb, ZDIM), lambda i: (i, 0))

    out = pl.pallas_call(
        _encoder_kernel,
        out_shape=jax.ShapeDtypeStruct((b_pad, ZDIM), jnp.float32),
        grid=grid,
        in_specs=[x_spec] + param_specs,
        out_specs=out_spec,
        compiler_params=pltpu.CompilerParams(
            dimension_semantics=("parallel",),  # shard batch tiles across TCs
        ),
    )(x, *folded)
    return out[:B]


# ---------------------------------------------------------------------------
# Init + references
# ---------------------------------------------------------------------------
def init_params(key):
    """Deterministic init mirroring PyTorch shapes.

    Linear: weight stored as (in,out), uniform(-1/sqrt(fan_in), +1/sqrt(fan_in));
            bias stored as (1,out), same range.
    LayerNorm: gamma=1, beta=0, stored as (1,out).
    """
    dims = (IN_DIM,) + HIDDEN + (ZDIM,)
    params = []
    for i in range(len(dims) - 1):
        fan_in, fan_out = dims[i], dims[i + 1]
        key, kw, kb = jax.random.split(key, 3)
        bound = 1.0 / jnp.sqrt(jnp.float32(fan_in))
        w = jax.random.uniform(kw, (fan_in, fan_out), jnp.float32, -bound, bound)
        b = jax.random.uniform(kb, (1, fan_out), jnp.float32, -bound, bound)
        params.append(w)
        params.append(b)
        if i < len(dims) - 2:  # LayerNorm follows every hidden Linear
            params.append(jnp.ones((1, fan_out), jnp.float32))   # gamma
            params.append(jnp.zeros((1, fan_out), jnp.float32))  # beta
    return tuple(params)


def reference_forward(x, params):
    """Pure-JAX f32 reference in the original (unfolded) PyTorch op order."""
    (w1, b1, g1, be1, w2, b2, g2, be2, w3, b3, g3, be3, w4, b4) = params

    def ln(h, g, b):
        mu = jnp.mean(h, axis=-1, keepdims=True)
        var = jnp.mean((h - mu) ** 2, axis=-1, keepdims=True)
        return (h - mu) / jnp.sqrt(var + LN_EPS) * g + b

    h = x
    for w, b, g, be in ((w1, b1, g1, be1), (w2, b2, g2, be2), (w3, b3, g3, be3)):
        h = ln(jnp.maximum(h @ w + b, 0.0), g, be)
    return h @ w4 + b4


def reference_forward_folded(x, params, matmul_dtype=jnp.float32):
    """Pure-JAX reference of the *folded* formulation with matmuls in
    `matmul_dtype` (f32 accumulation) — used to check the bf16 kernel path
    with a tight tolerance."""
    w1, b1, w2, b2, w3, b3, w4, b4 = _fold_params(params, matmul_dtype)

    def ln(h):
        mu = jnp.mean(h, axis=-1, keepdims=True)
        var = jnp.mean(h * h, axis=-1, keepdims=True) - mu * mu
        return (h - mu) * jax.lax.rsqrt(var + LN_EPS)

    h = x.astype(matmul_dtype)
    for w, b in ((w1, b1), (w2, b2), (w3, b3)):
        h = jnp.dot(h.astype(matmul_dtype), w,
                    preferred_element_type=jnp.float32) + b
        h = ln(jnp.maximum(h, 0.0))
    return jnp.dot(h.astype(matmul_dtype), w4,
                   preferred_element_type=jnp.float32) + b4


# ---------------------------------------------------------------------------
# Demo / self-check
# ---------------------------------------------------------------------------
if __name__ == "__main__":
    key = jax.random.PRNGKey(0)
    key, kx = jax.random.split(key)
    B = 37  # deliberately not tile-aligned: exercises padding + multi-step grid
    x = jax.random.normal(kx, (B, IN_DIM), jnp.float32)

    params = init_params(key)
    ref = reference_forward(x, params)

    # f32 path, tiny tile -> 3 grid steps at this toy size.
    out = jax.block_until_ready(encoder_forward(x, params, block_rows=16))
    assert out.shape == (B, ZDIM)
    assert jnp.allclose(out, ref, atol=1e-3, rtol=1e-3), \
        "f32 kernel mismatch vs reference"

    # Default large-tile path (tb capped so the grid keeps >=2 steps).
    out_def = jax.block_until_ready(encoder_forward(x, params))
    assert jnp.allclose(out_def, ref, atol=1e-3, rtol=1e-3), \
        "default-tile kernel mismatch vs reference"

    # bf16 matmul path: compare against a bf16-matmul folded JAX reference
    # (tight), plus a loose sanity check vs the f32 reference.
    ref_bf16 = reference_forward_folded(x, params, matmul_dtype=jnp.bfloat16)
    out_bf16 = jax.block_until_ready(
        encoder_forward(x, params, block_rows=16, matmul_dtype=jnp.bfloat16))
    assert out_bf16.shape == (B, ZDIM)
    assert bool(jnp.all(jnp.isfinite(out_bf16)))
    assert jnp.allclose(out_bf16, ref_bf16, atol=5e-3, rtol=5e-3), \
        "bf16 kernel mismatch vs bf16 reference"
    assert jnp.allclose(out_bf16, ref, atol=1e-1, rtol=1e-1), \
        "bf16 kernel drifted from f32 reference"

    print("KERNEL_OK")
</pallas_src>

<mosaic_0001>
module attributes {stable_mosaic.version = 11 : i64} {
  func.func @_encoder_kernel(%arg0: i32, %arg1: memref<16x135xf32, #tpu.memory_space<vmem>>, %arg2: memref<135x128xf32, #tpu.memory_space<vmem>>, %arg3: memref<1x128xf32, #tpu.memory_space<vmem>>, %arg4: memref<128x64xf32, #tpu.memory_space<vmem>>, %arg5: memref<1x64xf32, #tpu.memory_space<vmem>>, %arg6: memref<64x32xf32, #tpu.memory_space<vmem>>, %arg7: memref<1x32xf32, #tpu.memory_space<vmem>>, %arg8: memref<32x8xf32, #tpu.memory_space<vmem>>, %arg9: memref<1x8xf32, #tpu.memory_space<vmem>>, %arg10: memref<16x8xf32, #tpu.memory_space<vmem>>) attributes {dimension_semantics = [#tpu.dimension_semantics<parallel>], iteration_bounds = array<i64: 3>, scalar_prefetch = 0 : i64, scratch_operands = 0 : i64, tpu.core_type = #tpu.core_type<tc>, window_params = [{transform_indices = @transform_0, window_bounds = array<i64: 16, 135>}, {pipeline_mode = #tpu.pipeline_mode<synchronous>, transform_indices = @transform_1, window_bounds = array<i64: 135, 128>}, {pipeline_mode = #tpu.pipeline_mode<synchronous>, transform_indices = @transform_2, window_bounds = array<i64: 1, 128>}, {pipeline_mode = #tpu.pipeline_mode<synchronous>, transform_indices = @transform_3, window_bounds = array<i64: 128, 64>}, {pipeline_mode = #tpu.pipeline_mode<synchronous>, transform_indices = @transform_4, window_bounds = array<i64: 1, 64>}, {pipeline_mode = #tpu.pipeline_mode<synchronous>, transform_indices = @transform_5, window_bounds = array<i64: 64, 32>}, {pipeline_mode = #tpu.pipeline_mode<synchronous>, transform_indices = @transform_6, window_bounds = array<i64: 1, 32>}, {pipeline_mode = #tpu.pipeline_mode<synchronous>, transform_indices = @transform_7, window_bounds = array<i64: 32, 8>}, {pipeline_mode = #tpu.pipeline_mode<synchronous>, transform_indices = @transform_8, window_bounds = array<i64: 1, 8>}, {transform_indices = @transform_9, window_bounds = array<i64: 16, 8>}]} {
    %c0 = arith.constant 0 : index
    %c0_0 = arith.constant 0 : index
    %0 = vector.load %arg1[%c0, %c0_0] : memref<16x135xf32, #tpu.memory_space<vmem>>, vector<16x135xf32>
    %c0_1 = arith.constant 0 : index
    %c0_2 = arith.constant 0 : index
    %1 = vector.load %arg2[%c0_1, %c0_2] : memref<135x128xf32, #tpu.memory_space<vmem>>, vector<135x128xf32>
    %cst = arith.constant dense<0.000000e+00> : vector<16x128xf32>
    %2 = tpu.matmul %0, %1, %cst {dimension_numbers = #tpu.dot_dimension_numbers<[1], [0], [0], [1], [0, 0, 1, 1], [], []>} : vector<16x135xf32>, vector<135x128xf32>, vector<16x128xf32> -> vector<16x128xf32>
    %c0_3 = arith.constant 0 : index
    %c0_4 = arith.constant 0 : index
    %3 = vector.load %arg3[%c0_3, %c0_4] : memref<1x128xf32, #tpu.memory_space<vmem>>, vector<1x128xf32>
    %4 = vector.broadcast %3 : vector<1x128xf32> to vector<16x128xf32>
    %5 = arith.addf %2, %4 : vector<16x128xf32>
    %cst_5 = arith.constant 0.000000e+00 : f32
    %6 = vector.broadcast %cst_5 : f32 to vector<16x128xf32>
    %7 = arith.maximumf %5, %6 : vector<16x128xf32>
    %cst_6 = arith.constant dense<0.000000e+00> : vector<16xf32>
    %8 = vector.multi_reduction <add>, %7, %cst_6 [1] : vector<16x128xf32> to vector<16xf32>
    %9 = vector.shape_cast %8 : vector<16xf32> to vector<16x1xf32>
    %10 = arith.mulf %7, %7 : vector<16x128xf32>
    %cst_7 = arith.constant dense<0.000000e+00> : vector<16xf32>
    %11 = vector.multi_reduction <add>, %10, %cst_7 [1] : vector<16x128xf32> to vector<16xf32>
    %12 = vector.shape_cast %11 : vector<16xf32> to vector<16x1xf32>
    %cst_8 = arith.constant 7.812500e-03 : f32
    %13 = vector.broadcast %cst_8 : f32 to vector<16x1xf32>
    %14 = arith.mulf %9, %13 : vector<16x1xf32>
    %cst_9 = arith.constant 7.812500e-03 : f32
    %15 = vector.broadcast %cst_9 : f32 to vector<16x1xf32>
    %16 = arith.mulf %12, %15 : vector<16x1xf32>
    %17 = arith.mulf %14, %14 : vector<16x1xf32>
    %18 = arith.subf %16, %17 : vector<16x1xf32>
    %19 = vector.broadcast %14 : vector<16x1xf32> to vector<16x128xf32>
    %20 = arith.subf %7, %19 : vector<16x128xf32>
    %cst_10 = arith.constant 9.99999974E-6 : f32
    %21 = vector.broadcast %cst_10 : f32 to vector<16x1xf32>
    %22 = arith.addf %18, %21 : vector<16x1xf32>
    %23 = math.rsqrt %22 : vector<16x1xf32>
    %24 = vector.broadcast %23 : vector<16x1xf32> to vector<16x128xf32>
    %25 = arith.mulf %20, %24 : vector<16x128xf32>
    %c0_11 = arith.constant 0 : index
    %c0_12 = arith.constant 0 : index
    %26 = vector.load %arg4[%c0_11, %c0_12] : memref<128x64xf32, #tpu.memory_space<vmem>>, vector<128x64xf32>
    %cst_13 = arith.constant dense<0.000000e+00> : vector<16x64xf32>
    %27 = tpu.matmul %25, %26, %cst_13 {dimension_numbers = #tpu.dot_dimension_numbers<[1], [0], [0], [1], [0, 0, 1, 1], [], []>} : vector<16x128xf32>, vector<128x64xf32>, vector<16x64xf32> -> vector<16x64xf32>
    %c0_14 = arith.constant 0 : index
    %c0_15 = arith.constant 0 : index
    %28 = vector.load %arg5[%c0_14, %c0_15] : memref<1x64xf32, #tpu.memory_space<vmem>>, vector<1x64xf32>
    %29 = vector.broadcast %28 : vector<1x64xf32> to vector<16x64xf32>
    %30 = arith.addf %27, %29 : vector<16x64xf32>
    %cst_16 = arith.constant 0.000000e+00 : f32
    %31 = vector.broadcast %cst_16 : f32 to vector<16x64xf32>
    %32 = arith.maximumf %30, %31 : vector<16x64xf32>
    %cst_17 = arith.constant dense<0.000000e+00> : vector<16xf32>
    %33 = vector.multi_reduction <add>, %32, %cst_17 [1] : vector<16x64xf32> to vector<16xf32>
    %34 = vector.shape_cast %33 : vector<16xf32> to vector<16x1xf32>
    %35 = arith.mulf %32, %32 : vector<16x64xf32>
    %cst_18 = arith.constant dense<0.000000e+00> : vector<16xf32>
    %36 = vector.multi_reduction <add>, %35, %cst_18 [1] : vector<16x64xf32> to vector<16xf32>
    %37 = vector.shape_cast %36 : vector<16xf32> to vector<16x1xf32>
    %cst_19 = arith.constant 1.562500e-02 : f32
    %38 = vector.broadcast %cst_19 : f32 to vector<16x1xf32>
    %39 = arith.mulf %34, %38 : vector<16x1xf32>
    %cst_20 = arith.constant 1.562500e-02 : f32
    %40 = vector.broadcast %cst_20 : f32 to vector<16x1xf32>
    %41 = arith.mulf %37, %40 : vector<16x1xf32>
    %42 = arith.mulf %39, %39 : vector<16x1xf32>
    %43 = arith.subf %41, %42 : vector<16x1xf32>
    %44 = vector.broadcast %39 : vector<16x1xf32> to vector<16x64xf32>
    %45 = arith.subf %32, %44 : vector<16x64xf32>
    %cst_21 = arith.constant 9.99999974E-6 : f32
    %46 = vector.broadcast %cst_21 : f32 to vector<16x1xf32>
    %47 = arith.addf %43, %46 : vector<16x1xf32>
    %48 = math.rsqrt %47 : vector<16x1xf32>
    %49 = vector.broadcast %48 : vector<16x1xf32> to vector<16x64xf32>
    %50 = arith.mulf %45, %49 : vector<16x64xf32>
    %c0_22 = arith.constant 0 : index
    %c0_23 = arith.constant 0 : index
    %51 = vector.load %arg6[%c0_22, %c0_23] : memref<64x32xf32, #tpu.memory_space<vmem>>, vector<64x32xf32>
    %cst_24 = arith.constant dense<0.000000e+00> : vector<16x32xf32>
    %52 = tpu.matmul %50, %51, %cst_24 {dimension_numbers = #tpu.dot_dimension_numbers<[1], [0], [0], [1], [0, 0, 1, 1], [], []>} : vector<16x64xf32>, vector<64x32xf32>, vector<16x32xf32> -> vector<16x32xf32>
    %c0_25 = arith.constant 0 : index
    %c0_26 = arith.constant 0 : index
    %53 = vector.load %arg7[%c0_25, %c0_26] : memref<1x32xf32, #tpu.memory_space<vmem>>, vector<1x32xf32>
    %54 = vector.broadcast %53 : vector<1x32xf32> to vector<16x32xf32>
    %55 = arith.addf %52, %54 : vector<16x32xf32>
    %cst_27 = arith.constant 0.000000e+00 : f32
    %56 = vector.broadcast %cst_27 : f32 to vector<16x32xf32>
    %57 = arith.maximumf %55, %56 : vector<16x32xf32>
    %cst_28 = arith.constant dense<0.000000e+00> : vector<16xf32>
    %58 = vector.multi_reduction <add>, %57, %cst_28 [1] : vector<16x32xf32> to vector<16xf32>
    %59 = vector.shape_cast %58 : vector<16xf32> to vector<16x1xf32>
    %60 = arith.mulf %57, %57 : vector<16x32xf32>
    %cst_29 = arith.constant dense<0.000000e+00> : vector<16xf32>
    %61 = vector.multi_reduction <add>, %60, %cst_29 [1] : vector<16x32xf32> to vector<16xf32>
    %62 = vector.shape_cast %61 : vector<16xf32> to vector<16x1xf32>
    %cst_30 = arith.constant 3.125000e-02 : f32
    %63 = vector.broadcast %cst_30 : f32 to vector<16x1xf32>
    %64 = arith.mulf %59, %63 : vector<16x1xf32>
    %cst_31 = arith.constant 3.125000e-02 : f32
    %65 = vector.broadcast %cst_31 : f32 to vector<16x1xf32>
    %66 = arith.mulf %62, %65 : vector<16x1xf32>
    %67 = arith.mulf %64, %64 : vector<16x1xf32>
    %68 = arith.subf %66, %67 : vector<16x1xf32>
    %69 = vector.broadcast %64 : vector<16x1xf32> to vector<16x32xf32>
    %70 = arith.subf %57, %69 : vector<16x32xf32>
    %cst_32 = arith.constant 9.99999974E-6 : f32
    %71 = vector.broadcast %cst_32 : f32 to vector<16x1xf32>
    %72 = arith.addf %68, %71 : vector<16x1xf32>
    %73 = math.rsqrt %72 : vector<16x1xf32>
    %74 = vector.broadcast %73 : vector<16x1xf32> to vector<16x32xf32>
    %75 = arith.mulf %70, %74 : vector<16x32xf32>
    %c0_33 = arith.constant 0 : index
    %c0_34 = arith.constant 0 : index
    %76 = vector.load %arg8[%c0_33, %c0_34] : memref<32x8xf32, #tpu.memory_space<vmem>>, vector<32x8xf32>
    %cst_35 = arith.constant dense<0.000000e+00> : vector<16x8xf32>
    %77 = tpu.matmul %75, %76, %cst_35 {dimension_numbers = #tpu.dot_dimension_numbers<[1], [0], [0], [1], [0, 0, 1, 1], [], []>} : vector<16x32xf32>, vector<32x8xf32>, vector<16x8xf32> -> vector<16x8xf32>
    %c0_36 = arith.constant 0 : index
    %c0_37 = arith.constant 0 : index
    %78 = vector.load %arg9[%c0_36, %c0_37] : memref<1x8xf32, #tpu.memory_space<vmem>>, vector<1x8xf32>
    %79 = vector.broadcast %78 : vector<1x8xf32> to vector<16x8xf32>
    %80 = arith.addf %77, %79 : vector<16x8xf32>
    %c0_38 = arith.constant 0 : index
    %c0_39 = arith.constant 0 : index
    %81 = vector.load %arg10[%c0_38, %c0_39] : memref<16x8xf32, #tpu.memory_space<vmem>>, vector<16x8xf32>
    tpu.vector_store %arg10[%c0_38, %c0_39], %80 {strides = array<i32>} : memref<16x8xf32, #tpu.memory_space<vmem>>, vector<16x8xf32>,
    return
  }
  func.func @transform_0(%arg0: i32) -> (i32, i32) {
    %c0_i32 = arith.constant 0 : i32
    %c0_i32_0 = arith.constant 0 : i32
    return %arg0, %c0_i32 : i32, i32
  }
  func.func @transform_1(%arg0: i32) -> (i32, i32) {
    %c0_i32 = arith.constant 0 : i32
    %c0_i32_0 = arith.constant 0 : i32
    %c0_i32_1 = arith.constant 0 : i32
    return %c0_i32, %c0_i32_0 : i32, i32
  }
  func.func @transform_2(%arg0: i32) -> (i32, i32) {
    %c0_i32 = arith.constant 0 : i32
    %c0_i32_0 = arith.constant 0 : i32
    %c0_i32_1 = arith.constant 0 : i32
    return %c0_i32, %c0_i32_0 : i32, i32
  }
  func.func @transform_3(%arg0: i32) -> (i32, i32) {
    %c0_i32 = arith.constant 0 : i32
    %c0_i32_0 = arith.constant 0 : i32
    %c0_i32_1 = arith.constant 0 : i32
    return %c0_i32, %c0_i32_0 : i32, i32
  }
  func.func @transform_4(%arg0: i32) -> (i32, i32) {
    %c0_i32 = arith.constant 0 : i32
    %c0_i32_0 = arith.constant 0 : i32
    %c0_i32_1 = arith.constant 0 : i32
    return %c0_i32, %c0_i32_0 : i32, i32
  }
  func.func @transform_5(%arg0: i32) -> (i32, i32) {
    %c0_i32 = arith.constant 0 : i32
    %c0_i32_0 = arith.constant 0 : i32
    %c0_i32_1 = arith.constant 0 : i32
    return %c0_i32, %c0_i32_0 : i32, i32
  }
  func.func @transform_6(%arg0: i32) -> (i32, i32) {
    %c0_i32 = arith.constant 0 : i32
    %c0_i32_0 = arith.constant 0 : i32
    %c0_i32_1 = arith.constant 0 : i32
    return %c0_i32, %c0_i32_0 : i32, i32
  }
  func.func @transform_7(%arg0: i32) -> (i32, i32) {
    %c0_i32 = arith.constant 0 : i32
    %c0_i32_0 = arith.constant 0 : i32
    %c0_i32_1 = arith.constant 0 : i32
    return %c0_i32, %c0_i32_0 : i32, i32
  }
  func.func @transform_8(%arg0: i32) -> (i32, i32) {
    %c0_i32 = arith.constant 0 : i32
    %c0_i32_0 = arith.constant 0 : i32
    %c0_i32_1 = arith.constant 0 : i32
    return %c0_i32, %c0_i32_0 : i32, i32
  }
  func.func @transform_9(%arg0: i32) -> (i32, i32) {
    %c0_i32 = arith.constant 0 : i32
    %c0_i32_0 = arith.constant 0 : i32
    return %arg0, %c0_i32 : i32, i32
  }
}

</mosaic_0001>

<bundles_post_ra>
// kernel: tpu_custom_call.1
= control target key start
LH: loop header
LB: loop body
LE: loop exit
PB: predicated region body
PF: predicated region fallthrough
CT: control target
= control target key end

     0   :  { %s1177_s30 = smov 0   ;;  %s1365_s0 = inlined_call_operand.vmem [shape: f32[48,135], index: 0, kind: input, shape index: {}]   ;;  %s1366_s1 = inlined_call_operand.vmem [shape: f32[135,128], index: 1, kind: input, shape index: {}]   ;;  %s1367_s2 = inlined_call_operand.vmem [shape: f32[1,128], index: 2, kind: input, shape index: {}]   ;;  %s1368_s3 = inlined_call_operand.vmem [shape: f32[128,64], index: 3, kind: input, shape index: {}]   ;;  %s1369_s4 = inlined_call_operand.vmem [shape: f32[1,64], index: 4, kind: input, shape index: {}]   ;;  %s1370_s5 = inlined_call_operand.vmem [shape: f32[64,32], index: 5, kind: input, shape index: {}]   ;;  %s1371_s6 = inlined_call_operand.vmem [shape: f32[1,32], index: 6, kind: input, shape index: {}]   ;;  %s1372_s7 = inlined_call_operand.vmem [shape: f32[32,8], index: 7, kind: input, shape index: {}]   ;;  %s1373_s8 = inlined_call_operand.vmem [shape: f32[1,8], index: 8, kind: input, shape index: {}]   ;;  %s1374_s9 = inlined_call_operand.vmem [shape: f32[48,8], index: 9, kind: output, shape index: {}]  }
   0x1 LB: > { %s892_s10 = sadd.s32 4294967295, %s1123_s30   ;;  %p896_p0 = scmp.ge.s32.totalorder %s1123_s30, 1  ;;  %s1123_s30 = sphi %s1177_s30, %s19_s30  }
   0x2   : > { %p289_p1 = scmp.lt.s32.totalorder %s1123_s30, 4 }
   0x4   : > { %p290_p2 = pnand %p896_p0, %p289_p1 }
   0x5   : > { %v343_v0 = vld [vmem:[%s1366_s1] sm:$0xff] (!%p290_p2)  ;;  %v344_v1 = vld [vmem:[%s1366_s1 + $0x8] sm:$0xff] (!%p290_p2)  ;;  %v345_v2 = vld [vmem:[%s1366_s1 + $0x10] sm:$0xff] (!%p290_p2)  ;;  %v1125_v3 = vmov (!%p290_p2), 0.0|0.0   ;;  %s897_s19 = sshll.u32 (!%p290_p2), %s892_s10, 1  ;;  %vm367_vm0 = vcmask (!%p290_p2), 56320  }
   0x6   : > { %293 = sbr.rel (%p290_p2) target bundleno = 1408 (0x580), region = 56  ;;  %1015 = vmatprep.subr.bf16.mxu0 (!%p290_p2), %v1125_v3  ;;  %v1016_v4 = vpack.c.bf16 (!%p290_p2), %v344_v1, %v343_v0  ;;  %v346_v5 = vld [vmem:[%s1366_s1 + $0x18] sm:$0xff] (!%p290_p2)  ;;  %p327_p3 = scmp.lt.s32.totalorder (!%p290_p2), %s897_s19, 5  ;;  %v347_v7 = vld [vmem:[%s1366_s1 + $0x20] sm:$0xff] (!%p290_p2)  ;;  %v348_v8 = vld [vmem:[%s1366_s1 + $0x28] sm:$0xff] (!%p290_p2)  ;;  %v1126_v26 = vmov (!%p290_p2), 0.0  }
   0x7   : > { %v1019_v6 = vpack.c.bf16 (!%p290_p2), %v346_v5, %v345_v2  ;;  %v1022_v9 = vpack.c.bf16 (!%p290_p2), %v348_v8, %v347_v7  ;;  %v349_v10 = vld [vmem:[%s1366_s1 + $0x30] sm:$0xff] (!%p290_p2)  ;;  %v350_v11 = vld [vmem:[%s1366_s1 + $0x38] sm:$0xff] (!%p290_p2)  ;;  %v351_v14 = vld [vmem:[%s1366_s1 + $0x40] sm:$0xff] (!%p290_p2)  ;;  %vm374_vm1 = vcmask (!%p290_p2), 1046528   ;;  %vm581_vm2 = vcmask (!%p290_p2), 523264  }
   0x8   : > { %1017 = vmatpush1.bf16.msra.mxu0 (!%p290_p2), %v1016_v4  ;;  %v1025_v13 = vpack.c.bf16 (!%p290_p2), %v350_v11, %v349_v10  ;;  %v352_v15 = vld [vmem:[%s1366_s1 + $0x48] sm:$0xff] (!%p290_p2)  ;;  %v353_v17 = vld [vmem:[%s1366_s1 + $0x50] sm:$0xff] (!%p290_p2)  ;;  %v354_v18 = vld [vmem:[%s1366_s1 + $0x58] sm:$0xff] (!%p290_p2)  ;;  %vm710_vm3 = vcmask (!%p290_p2), 261120   ;;  %vm833_vm4 = vcmask (!%p290_p2), 64512  }
   0x9   : > { %1018 = vmatprep.subr.bf16.mxu0 (!%p290_p2), %v1125_v3  ;;  %v1028_v16 = vpack.c.bf16 (!%p290_p2), %v352_v15, %v351_v14  ;;  %v1031_v19 = vpack.c.bf16 (!%p290_p2), %v354_v18, %v353_v17  ;;  %v355_v20 = vld [vmem:[%s1366_s1 + $0x60] sm:$0xff] (!%p290_p2)  ;;  %v356_v21 = vld [vmem:[%s1366_s1 + $0x68] sm:$0xff] (!%p290_p2)  ;;  %v357_v23 = vld [vmem:[%s1366_s1 + $0x70] sm:$0xff] (!%p290_p2) }
   0xa   : > { %v1034_v22 = vpack.c.bf16 (!%p290_p2), %v356_v21, %v355_v20  ;;  %v358_v24 = vld [vmem:[%s1366_s1 + $0x78] sm:$0xff] (!%p290_p2)  ;;  %v359_v27 = vld [vmem:[%s1366_s1 + $0x80] sm:$0x7f] (!%p290_p2)  ;;  %v482_v32 = vld [vmem:[%s1368_s3 + $0x8] sm:$0xff] (!%p290_p2) }
   0xb   : > { %v1037_v25 = vpack.c.bf16 (!%p290_p2), %v358_v24, %v357_v23  ;;  %v481_v31 = vld [vmem:[%s1368_s3] sm:$0xff] (!%p290_p2)  ;;  %v483_v33 = vld [vmem:[%s1368_s3 + $0x10] sm:$0xff] (!%p290_p2)  ;;  %v484_v35 = vld [vmem:[%s1368_s3 + $0x18] sm:$0xff] (!%p290_p2) }
   0xc   : > { %1020 = vmatpush1.bf16.msra.mxu0 (!%p290_p2), %v1019_v6  ;;  %v1039_v34 = vpack.c.bf16 (!%p290_p2), %v482_v32, %v481_v31  ;;  %v1043_v36 = vpack.c.bf16 (!%p290_p2), %v484_v35, %v483_v33  ;;  %v902_v37 = vld [vmem:[%s1367_s2] ss:$0 sm:$0xff] (!%p290_p2)  ;;  %v486_v49 = vld [vmem:[%s1368_s3 + $0x28] sm:$0xff] (!%p290_p2)  ;;  %v487_v51 = vld [vmem:[%s1368_s3 + $0x30] sm:$0xff] (!%p290_p2) }
   0xd   : > { %s1376_s19 = smov (!%p327_p3, %s897_s19), 5  ;;  %1021 = vmatprep.subr.bf16.mxu0 %v1125_v3  ;;  %v485_v48 = vld [vmem:[%s1368_s3 + $0x20] sm:$0xff]  ;;  %v488_v52 = vld [vmem:[%s1368_s3 + $0x38] sm:$0xff]  ;;  %v490_v55 = vld [vmem:[%s1368_s3 + $0x48] sm:$0xff] }
   0xe   : > { %s915_s24 = sshll.u32 %s1376_s19, 4  ;;  %1040 = vmatprep.subr.bf16.mxu1 %v1039_v34  ;;  %v1047_v50 = vpack.c.bf16 %v486_v49, %v485_v48  ;;  %v1051_v53 = vpack.c.bf16 %v488_v52, %v487_v51  ;;  %v489_v54 = vld [vmem:[%s1368_s3 + $0x40] sm:$0xff]  ;;  %v491_v57 = vld [vmem:[%s1368_s3 + $0x50] sm:$0xff]  ;;  %v492_v58 = vld [vmem:[%s1368_s3 + $0x58] sm:$0xff]  ;;  %s901_s17 = sshll.u32 %s1376_s19, 3 }
   0xf   : > { %s1209_s27 = scalar_lea.vmem %s1365_s0, %s915_s24  ;;  %1042 = vmatpush3.bf16.msra.mxu1 %v1039_v34  ;;  %v1055_v56 = vpack.c.bf16 %v490_v55, %v489_v54  ;;  %v1059_v59 = vpack.c.bf16 %v492_v58, %v491_v57  ;;  %v493_v60 = vld [vmem:[%s1368_s3 + $0x60] sm:$0xff]  ;;  %v494_v61 = vld [vmem:[%s1368_s3 + $0x68] sm:$0xff]  ;;  %v495_v62 = vld [vmem:[%s1368_s3 + $0x70] sm:$0xff]  ;;  %s337_s22 = scalar_lea.vmem %s1374_s9, %s901_s17 }
  0x10   : > { %v340_v12 = vld [vmem:[%s1209_s27 + $0x8] sm:$0xff]  ;;  %1023 = vmatpush1.bf16.msra.mxu0 %v1022_v9  ;;  %v339_v28 = vld [vmem:[%s1209_s27] sm:$0xff]  ;;  %v342_v29 = vld [vmem:[%s1209_s27 + $0x18] sm:$0xff]  ;;  %1044 = vmatprep.subr.bf16.mxu1 %v1043_v36  ;;  %v1063_v63 = vpack.c.bf16 %v494_v61, %v493_v60 }
  0x11   : > { %904 = vmatprep.mubr.msk.f32.mxu0 %vm367_vm0, %v340_v12  ;;  %1024 = vmatprep.subr.bf16.mxu0 %v1125_v3  ;;  %v341_v30 = vld [vmem:[%s1209_s27 + $0x10] sm:$0xff]  ;;  %v496_v0 = vld [vmem:[%s1368_s3 + $0x78] sm:$0xff]  ;;  %v612_v35 = vld [vmem:[%s1370_s5] sm:$0xff] }
  0x12   : > { %v1067_v1 = vpack.c.bf16 %v496_v0, %v495_v62 }
  0x13   : > { %1046 = vmatpush3.bf16.msra.mxu1 %v1043_v36  ;;  %v613_v36 = vld [vmem:[%s1370_s5 + $0x8] sm:$0xff] }
  0x14   : > { %1026 = vmatpush1.bf16.msra.mxu0 %v1025_v13  ;;  %1048 = vmatprep.subr.bf16.mxu1 %v1047_v50 }
  0x15   : > { %1027 = vmatprep.subr.bf16.mxu0 %v1125_v3 }
  0x17   : > { %1050 = vmatpush3.bf16.msra.mxu1 %v1047_v50 }
  0x18   : > { %1029 = vmatpush1.bf16.msra.mxu0 %v1028_v16  ;;  %1052 = vmatprep.subr.bf16.mxu1 %v1051_v53 }
  0x19   : > { %1030 = vmatprep.subr.bf16.mxu0 %v1125_v3 }
  0x1b   : > { %1054 = vmatpush3.bf16.msra.mxu1 %v1051_v53 }
  0x1c   : > { %1032 = vmatpush1.bf16.msra.mxu0 %v1031_v19  ;;  %1056 = vmatprep.subr.bf16.mxu1 %v1055_v56 }
  0x1d   : > { %1033 = vmatprep.subr.bf16.mxu0 %v1125_v3 }
  0x1f   : > { %1058 = vmatpush3.bf16.msra.mxu1 %v1055_v56 }
  0x20   : > { %1035 = vmatpush1.bf16.msra.mxu0 %v1034_v22  ;;  %1060 = vmatprep.subr.bf16.mxu1 %v1059_v59  ;;  %v906_v22 = vld [vmem:[%s1369_s4] ss:$0 sm:$0xff] }
  0x21   : > { %1036 = vmatprep.subr.bf16.mxu0 %v1125_v3 }
  0x23   : > { %1062 = vmatpush3.bf16.msra.mxu1 %v1059_v59 }
  0x24   : > { %1038 = vmatpush1.bf16.msra.mxu0 %v1037_v25  ;;  %1064 = vmatprep.subr.bf16.mxu1 %v1063_v63 }
  0x25   : > { %410 = vmatprep.subr.mxu0 %v1126_v26 }
  0x27   : > { %1066 = vmatpush3.bf16.msra.mxu1 %v1063_v63 }
  0x28   : > { %903 = vmatpush1.msk.msra.mxu0 %vm374_vm1, %v359_v27  ;;  %1068 = vmatprep.subr.bf16.mxu1 %v1067_v1 }
  0x29   : > { %443 = vmatmul.mubr.f32.vlgmr.msra.gmra.mrb[0].mxu0 %v339_v28 }
  0x2a   : > { %905 = vmatprep.mubr.msk.f32.mxu0 %vm367_vm0, %v342_v29 }
  0x2b   : > { %1070 = vmatpush3.bf16.msra.mxu1 %v1067_v1 }
  0x2d   : > { %448 = vmatmul.mubr.f32.gmra.mrb[2].mxu0 %v341_v30 }
  0xfc   : > { %v444_v38 = vpop.f32.mrb[0].mxu0 }
  0xfd   : > { %v445_v39 = vadd.f32 %v902_v37, %v444_v38  ;;  %v446_v40 = vpop.f32.mrb[1].mxu0  ;;  %v614_v38 = vld [vmem:[%s1370_s5 + $0x10] sm:$0xff] }
  0xff   : > { %v453_v41 = vmax.f32 %v445_v39, 0.0  ;;  %v615_v39 = vld [vmem:[%s1370_s5 + $0x18] sm:$0xff] }
 0x100   : > { %v449_v42 = vpop.f32.mrb[2].mxu0  ;;  %v1075_v40 = vpack.c.bf16 %v615_v39, %v614_v38 }
 0x101   : > { %v450_v43 = vadd.f32 %v902_v37, %v449_v42  ;;  %v451_v44 = vpop.f32.mrb[3].mxu0  ;;  %455 = vadd.xlane.f32.xlu0 %v453_v41  ;;  %v459_v45 = vmul.f32 %v453_v41, %v453_v41  ;;  %v1071_v37 = vpack.c.bf16 %v613_v36, %v612_v35  ;;  %v617_v42 = vld [vmem:[%s1370_s5 + $0x28] sm:$0xff] }
 0x102   : > { %v618_v44 = vld [vmem:[%s1370_s5 + $0x30] sm:$0xff] }
 0x103   : > { %v454_v46 = vmax.f32 %v450_v43, 0.0  ;;  %461 = vadd.xlane.f32.xlu1 %v459_v45  ;;  %1072 = vmatprep.subr.bf16.mxu1 %v1071_v37  ;;  %v619_v45 = vld [vmem:[%s1370_s5 + $0x38] sm:$0xff] }
 0x105   : > { %457 = vadd.xlane.f32.xlu0 %v454_v46  ;;  %v460_v47 = vmul.f32 %v454_v46, %v454_v46 }
 0x107   : > { %463 = vadd.xlane.f32.xlu1 %v460_v47 }
 0x18e   : > { %v456_v2 = vpop.xlane.xlu0 %455 }
 0x18f   : > { %v465_v3 = vmul.f32 0.0078125, %v456_v2 }
 0x190   : > { %v462_v4 = vpop.xlane.xlu1 %461 }
 0x191   : > { %v469_v5 = vmul.f32 %v465_v3, %v465_v3  ;;  %v467_v6 = vmul.f32 0.0078125, %v462_v4  ;;  %v473_v16 = vsub.f32 %v453_v41, %v465_v3  ;;  %v616_v41 = vld [vmem:[%s1370_s5 + $0x20] sm:$0xff] }
 0x192   : > { %v458_v7 = vpop.xlane.xlu0 %457  ;;  %v1079_v43 = vpack.c.bf16 %v617_v42, %v616_v41  ;;  %v907_v3 = vld [vmem:[%s1371_s6] ss:$0 sm:$0xff] }
 0x193   : > { %v471_v8 = vsub.f32 %v467_v6, %v469_v5  ;;  %v466_v9 = vmul.f32 0.0078125, %v458_v7  ;;  %v910_v42 = vld [vmem:[%s1373_s8] ss:$0 sm:$0xff] }
 0x194   : > { %v464_v10 = vpop.xlane.xlu1 %463 }
 0x195   : > { %v475_v11 = vadd.f32 1e-05, %v471_v8  ;;  %v470_v12 = vmul.f32 %v466_v9, %v466_v9  ;;  %v468_v13 = vmul.f32 0.0078125, %v464_v10  ;;  %v474_v19 = vsub.f32 %v454_v46, %v466_v9 }
 0x196   : > { %v1083_v46 = vpack.c.bf16 %v619_v45, %v618_v44 }
 0x197   : > { %1105 = vrsqrt.f32 %v475_v11  ;;  %v472_v14 = vsub.f32 %v468_v13, %v470_v12 }
 0x199   : > { %v476_v15 = vadd.f32 1e-05, %v472_v14 }
 0x19b   : > { %1107 = vrsqrt.f32 %v476_v15 }
 0x1a1   : > { %v1106_v17 = vpop.eup %1105 }
 0x1a2   : > { %v479_v18 = vmul.f32 %v1106_v17, %v473_v16  ;;  %v741_v16 = vld [vmem:[%s1372_s7] sm:$0xff]  ;;  %v742_v17 = vld [vmem:[%s1372_s7 + $0x8] sm:$0xff] }
 0x1a4   : > { %982 = vmatprep.mubr.f32.mxu1 %v479_v18  ;;  %v1087_v18 = vpack.c.bf16 %v742_v17, %v741_v16 }
 0x1a5   : > { %v1108_v20 = vpop.eup %1107 }
 0x1a6   : > { %v480_v21 = vmul.f32 %v1108_v20, %v474_v19  ;;  %1088 = vmatprep.subr.bf16.mxu0 %v1087_v18  ;;  %v743_v19 = vld [vmem:[%s1372_s7 + $0x10] sm:$0xff]  ;;  %v744_v20 = vld [vmem:[%s1372_s7 + $0x18] sm:$0xff] }
 0x1a7   : > { %1090 = vmatpush3.bf16.msra.mxu0 %v1087_v18 }
 0x1a8   : > { %983 = vmatmul.mubr.f32.vlgmr.msra.gmra.mrb[0].mxu1 %v480_v21  ;;  %v1091_v21 = vpack.c.bf16 %v744_v20, %v743_v19 }
 0x1a9   : > { %1074 = vmatpush3.bf16.msra.mxu1 %v1071_v37 }
 0x1aa   : > { %1076 = vmatprep.subr.bf16.mxu1 %v1075_v40  ;;  %1092 = vmatprep.subr.bf16.mxu0 %v1091_v21 }
 0x1ab   : > { %1094 = vmatpush3.bf16.msra.mxu0 %v1091_v21 }
 0x1ad   : > { %1078 = vmatpush3.bf16.msra.mxu1 %v1075_v40 }
 0x1ae   : > { %1080 = vmatprep.subr.bf16.mxu1 %v1079_v43 }
 0x1b1   : > { %1082 = vmatpush3.bf16.msra.mxu1 %v1079_v43 }
 0x1b2   : > { %1084 = vmatprep.subr.bf16.mxu1 %v1083_v46 }
 0x1b5   : > { %1086 = vmatpush3.bf16.msra.mxu1 %v1083_v46 }
 0x27b   : > { %v984_v23 = vpop.f32.mrb[0].mxu1 }
 0x27c   : > { %v576_v24 = vadd.f32 %v984_v23, %v906_v22  ;;  %v570_v25 = vpop.f32.mrb[1].mxu1 }
 0x27d   : > { %v571_v26 = vadd.f32 %v906_v22, %v570_v25 }
 0x27e   : > { %v580_v27 = vmax.f32 %v576_v24, 0.0 }
 0x27f   : > { %v579_v28 = vmax.f32 %v571_v26, 0.0 }
 0x280   : > { %v585_v29 = vsel %vm581_vm2, %v580_v27, 0.0  ;;  %v589_v30 = vmul.f32 %v580_v27, %v580_v27 }
 0x281   : > { %586 = vadd.xlane.f32.xlu1 %v585_v29  ;;  %v582_v31 = vsel %vm581_vm2, %v579_v28, 0.0  ;;  %v588_v32 = vmul.f32 %v579_v28, %v579_v28 }
 0x282   : > { %583 = vadd.xlane.f32.xlu0 %v582_v31  ;;  %v593_v33 = vsel %vm581_vm2, %v589_v30, 0.0 }
 0x283   : > { %v590_v34 = vsel %vm581_vm2, %v588_v32, 0.0 }
 0x285   : > { %594 = vadd.xlane.f32.xlu1 %v593_v33 }
 0x286   : > { %591 = vadd.xlane.f32.xlu0 %v590_v34 }
 0x30e   : > { %v587_v47 = vpop.xlane.xlu1 %586 }
 0x30f   : > { %v597_v48 = vmul.f32 0.015625, %v587_v47  ;;  %v584_v49 = vpop.xlane.xlu0 %583 }
 0x310   : > { %v596_v50 = vmul.f32 0.015625, %v584_v49 }
 0x311   : > { %v601_v52 = vmul.f32 %v597_v48, %v597_v48  ;;  %v605_v0 = vsub.f32 %v580_v27, %v597_v48 }
 0x312   : > { %v595_v51 = vpop.xlane.xlu1 %594  ;;  %v600_v55 = vmul.f32 %v596_v50, %v596_v50  ;;  %v604_v62 = vsub.f32 %v579_v28, %v596_v50 }
 0x313   : > { %v599_v53 = vmul.f32 0.015625, %v595_v51  ;;  %v592_v54 = vpop.xlane.xlu0 %591 }
 0x314   : > { %v598_v56 = vmul.f32 0.015625, %v592_v54 }
 0x315   : > { %v603_v57 = vsub.f32 %v599_v53, %v601_v52 }
 0x316   : > { %v602_v58 = vsub.f32 %v598_v56, %v600_v55 }
 0x317   : > { %v607_v59 = vadd.f32 1e-05, %v603_v57 }
 0x318   : > { %v606_v60 = vadd.f32 1e-05, %v602_v58 }
 0x319   : > { %1109 = vrsqrt.f32 %v607_v59 }
 0x31a   : > { %1111 = vrsqrt.f32 %v606_v60 }
 0x323   : > { %v1110_v61 = vpop.eup %1109 }
 0x324   : > { %v1112_v63 = vpop.eup %1111  ;;  %v611_v2 = vmul.f32 %v1110_v61, %v605_v0 }
 0x325   : > { %v610_v1 = vmul.f32 %v1112_v63, %v604_v62 }
 0x327   : > { %1001 = vmatprep.mubr.msk.f32.mxu1 %vm581_vm2, %v610_v1 }
 0x328   : > { %1002 = vmatmul.mubr.msk.f32.vlgmr.msra.gmra.mrb[2].mxu1 %vm581_vm2, %v611_v2 }
 0x3fb   : > { %v1003_v4 = vpop.f32.mrb[2].mxu1 }
 0x3fc   : > { %v705_v5 = vadd.f32 %v1003_v4, %v907_v3  ;;  %v699_v6 = vpop.f32.mrb[3].mxu1 }
 0x3fd   : > { %v700_v7 = vadd.f32 %v907_v3, %v699_v6 }
 0x3fe   : > { %v709_v8 = vmax.f32 %v705_v5, 0.0 }
 0x3ff   : > { %v708_v9 = vmax.f32 %v700_v7, 0.0 }
 0x400   : > { %v714_v10 = vsel %vm710_vm3, %v709_v8, 0.0  ;;  %v718_v11 = vmul.f32 %v709_v8, %v709_v8 }
 0x401   : > { %715 = vadd.xlane.f32.xlu1 %v714_v10  ;;  %v711_v12 = vsel %vm710_vm3, %v708_v9, 0.0  ;;  %v717_v13 = vmul.f32 %v708_v9, %v708_v9 }
 0x402   : > { %712 = vadd.xlane.f32.xlu0 %v711_v12  ;;  %v722_v14 = vsel %vm710_vm3, %v718_v11, 0.0 }
 0x403   : > { %v719_v15 = vsel %vm710_vm3, %v717_v13, 0.0 }
 0x405   : > { %723 = vadd.xlane.f32.xlu1 %v722_v14 }
 0x406   : > { %720 = vadd.xlane.f32.xlu0 %v719_v15 }
 0x48e   : > { %v716_v22 = vpop.xlane.xlu1 %715 }
 0x48f   : > { %v726_v23 = vmul.f32 0.03125, %v716_v22  ;;  %v713_v24 = vpop.xlane.xlu0 %712 }
 0x490   : > { %v725_v25 = vmul.f32 0.03125, %v713_v24 }
 0x491   : > { %v730_v27 = vmul.f32 %v726_v23, %v726_v23  ;;  %v734_v39 = vsub.f32 %v709_v8, %v726_v23 }
 0x492   : > { %v724_v26 = vpop.xlane.xlu1 %723  ;;  %v729_v30 = vmul.f32 %v725_v25, %v725_v25  ;;  %v733_v37 = vsub.f32 %v708_v9, %v725_v25 }
 0x493   : > { %v728_v28 = vmul.f32 0.03125, %v724_v26  ;;  %v721_v29 = vpop.xlane.xlu0 %720 }
 0x494   : > { %v727_v31 = vmul.f32 0.03125, %v721_v29 }
 0x495   : > { %v732_v32 = vsub.f32 %v728_v28, %v730_v27 }
 0x496   : > { %v731_v33 = vsub.f32 %v727_v31, %v729_v30 }
 0x497   : > { %v736_v34 = vadd.f32 1e-05, %v732_v32 }
 0x498   : > { %v735_v35 = vadd.f32 1e-05, %v731_v33 }
 0x499   : > { %1113 = vrsqrt.f32 %v736_v34 }
 0x49a   : > { %1115 = vrsqrt.f32 %v735_v35 }
 0x4a3   : > { %v1114_v36 = vpop.eup %1113 }
 0x4a4   : > { %v1116_v38 = vpop.eup %1115  ;;  %v740_v41 = vmul.f32 %v1114_v36, %v734_v39 }
 0x4a5   : > { %v739_v40 = vmul.f32 %v1116_v38, %v733_v37 }
 0x4a7   : > { %1012 = vmatprep.mubr.msk.f32.mxu0 %vm710_vm3, %v739_v40 }
 0x4a8   : > { %1013 = vmatmul.mubr.msk.f32.vlgmr.msra.gmra.mrb[4].mxu0 %vm710_vm3, %v740_v41 }
 0x57b   : > { %v1014_v43 = vpop.f32.mrb[4].mxu0 }
 0x57c   : > { %v824_v44 = vpop.f32.mrb[5].mxu0  ;;  %v830_v46 = vadd.f32 %v1014_v43, %v910_v42 }
 0x57d   : > { %v825_v45 = vadd.f32 %v910_v42, %v824_v44 }
 0x57e   : > { %835 = vst.msk [vmem:[%s337_s22 + $0x8] sm:$0xff] %vm833_vm4, %v830_v46 }
 0x57f   : > { %834 = vst.msk [vmem:[%s337_s22] sm:$0xff] %vm833_vm4, %v825_v45 }
 0x580 PF: > { %s19_s30 = sadd.s32 1, %s1123_s30  }
 0x581   : > { %p16_p4 = scmp.ge.s32.totalorder %s19_s30, 5  }
 0x583   :  { %18 = sbr.rel (!%p16_p4) target bundleno = 1 (0x1), region = 86 }

</bundles_post_ra>
